<compile_context>
chip_gen: v5e
topology: v5e:2x2
jax: 0.10.0
libtpu: 0.0.40
codegen_flags: <defaults>
</compile_context>

<pallas_src>
import jax
import jax.numpy as jnp
from jax.experimental import pallas as pl
from jax.experimental.pallas import tpu as pltpu

FINAL_SIM_TIME = 10.0
NO_NEURONS = 64
IN_FEATURES = 1 + 2 + 3   # = 6
OUT_FEATURES = 3
N_HIDDEN_MM = 4           # hidden_layer2..5 are the (64,64) matmuls

# Normalization constants matching the PyTorch forward:
#   t: (t-0)/10, Ifc: (I-100)/600, QH2: (Q-0)/2, ic1/ic2: /1.5, ic3: /4
_SHIFT = jnp.array([0.0, 100.0, 0.0, 0.0, 0.0, 0.0], dtype=jnp.float32)
_SCALE = jnp.array([FINAL_SIM_TIME, 600.0, 2.0, 1.5, 1.5, 4.0],
                   dtype=jnp.float32)


def _make_kernel(act_dtype):
    """Kernel factory. act_dtype: dtype fed to the hidden/output MXU dots."""

    def _mlp_kernel(x_ref, w1_ref, wh_ref, w6_ref, b_ref, o_ref):
        # x_ref : (6, tb)      f32, batch on lanes (normalization folded into w1)
        # w1_ref: (64, 6)      f32
        # wh_ref: (4, 64, 64)  act_dtype (hidden layers 2..5)
        # w6_ref: (3, 64)      act_dtype (output layer)
        # b_ref : (64, 6)      f32; col i = bias of layer i+1, col 5 rows 0:3 = out bias
        # o_ref : (3, tb)      f32, lane-dense store
        b = b_ref[...]

        # Layer 1 in f32: raw inputs span up to ~700, keep full precision.
        h = jnp.tanh(jnp.dot(w1_ref[...], x_ref[...],
                             preferred_element_type=jnp.float32) + b[:, 0:1])

        # Hidden layers 2..5 (static unroll; wh_ref[i] is a static slice).
        for i in range(N_HIDDEN_MM):
            h = jnp.tanh(jnp.dot(wh_ref[i], h.astype(act_dtype),
                                 preferred_element_type=jnp.float32)
                         + b[:, i + 1:i + 2])

        # Output layer (no activation).
        o_ref[...] = (jnp.dot(w6_ref[...], h.astype(act_dtype),
                              preferred_element_type=jnp.float32)
                      + b[0:OUT_FEATURES, 5:6])

    return _mlp_kernel


def net_forward(params, t, Ifc_in, QH2IN, ic1, ic2, ic3, *,
                batch_tile=2048, use_bf16=False, transpose_output=True):
    """Pallas implementation of Net.forward.

    All six inputs are (N, 1) float32 arrays. Returns (N, 3) float32 (or
    (3, N) if transpose_output=False). `params` is a list of six (W, b)
    pairs with W in PyTorch (out, in) layout and b of shape (out, 1).
    """
    assert batch_tile % 128 == 0, "batch_tile must be a multiple of 128 lanes"

    # Build (6, N) directly: reshape-of-(N,1) is free (no relayout transpose).
    cols = [t, Ifc_in, QH2IN, ic1, ic2, ic3]
    x = jnp.concatenate(
        [jnp.reshape(c.astype(jnp.float32), (1, -1)) for c in cols], axis=0)
    n = x.shape[1]

    # Tile selection: big tiles amortize per-grid-step overhead, but keep at
    # least 2 grid steps when N allows it so v7x can shard the "parallel"
    # batch axis across its two TensorCores.  Always a multiple of 128 lanes.
    tb = max(128, min(batch_tile, 128 * pl.cdiv(n, 2 * 128)))
    n_pad = pl.cdiv(n, tb) * tb
    if n_pad != n:
        x = jnp.pad(x, ((0, 0), (0, n_pad - n)))

    (w1, b1), (w2, b2), (w3, b3), (w4, b4), (w5, b5), (w6, b6) = params

    # Fold normalization into the first layer:
    #   W1 @ ((x - shift)/scale) + b1 == (W1/scale) @ x + (b1 - (W1/scale)@shift)
    w1p = (w1 * (1.0 / _SCALE)[None, :]).astype(jnp.float32)        # (64, 6)
    b1p = (b1 - (w1p @ _SHIFT)[:, None]).astype(jnp.float32)        # (64, 1)

    mm_dtype = jnp.bfloat16 if use_bf16 else jnp.float32
    wh = jnp.stack([w2, w3, w4, w5], axis=0).astype(mm_dtype)       # (4,64,64)
    w6p = w6.astype(mm_dtype)                                       # (3, 64)

    # Bias slab (64, 6): columns 0..4 hold the 5 hidden-layer biases,
    # column 5 rows 0:3 hold the output bias (rest zero).
    b6_pad = jnp.pad(b6.astype(jnp.float32),
                     ((0, NO_NEURONS - OUT_FEATURES), (0, 0)))
    b_slab = jnp.concatenate(
        [b1p, b2.astype(jnp.float32), b3.astype(jnp.float32),
         b4.astype(jnp.float32), b5.astype(jnp.float32), b6_pad],
        axis=1)                                                      # (64, 6)

    def full_spec(shape):
        # Whole-array block, same block for every batch tile (stays resident).
        return pl.BlockSpec(shape, lambda i: (0,) * len(shape))

    in_specs = [
        pl.BlockSpec((IN_FEATURES, tb), lambda i: (0, i)),           # x (tiled)
        full_spec(w1p.shape),
        full_spec(wh.shape),
        full_spec(w6p.shape),
        full_spec(b_slab.shape),
    ]
    out_specs = pl.BlockSpec((OUT_FEATURES, tb), lambda i: (0, i))

    # Advisory cost estimate so XLA can schedule/overlap around the kernel.
    weight_bytes = int(w1p.size * 4 + b_slab.size * 4
                       + wh.size * wh.dtype.itemsize
                       + w6p.size * w6p.dtype.itemsize)
    cost = pl.CostEstimate(
        flops=2 * n_pad * (IN_FEATURES * NO_NEURONS
                           + N_HIDDEN_MM * NO_NEURONS * NO_NEURONS
                           + NO_NEURONS * OUT_FEATURES),
        transcendentals=5 * NO_NEURONS * n_pad,
        bytes_accessed=4 * n_pad * (IN_FEATURES + OUT_FEATURES) + weight_bytes,
    )

    out = pl.pallas_call(
        _make_kernel(mm_dtype),
        out_shape=jax.ShapeDtypeStruct((OUT_FEATURES, n_pad), jnp.float32),
        grid=(n_pad // tb,),
        in_specs=in_specs,
        out_specs=out_specs,
        compiler_params=pltpu.CompilerParams(
            dimension_semantics=("parallel",)),
        cost_estimate=cost,
    )(x, w1p, wh, w6p, b_slab)

    out = out[:, :n]
    if transpose_output:
        return out.T          # (N, 3), matching the PyTorch module
    return out                # (3, N), lane-major (preferred for fused consumers)


def init_params(key):
    """Deterministic PyTorch-style Linear init: U(-1/sqrt(fan_in), +).

    Weights in PyTorch (out, in) layout; biases as (out, 1) columns.
    """
    dims = [IN_FEATURES, NO_NEURONS, NO_NEURONS, NO_NEURONS, NO_NEURONS,
            NO_NEURONS, OUT_FEATURES]
    params = []
    for i in range(6):
        fan_in, fan_out = dims[i], dims[i + 1]
        key, kw, kb = jax.random.split(key, 3)
        bound = 1.0 / jnp.sqrt(jnp.float32(fan_in))
        w = jax.random.uniform(kw, (fan_out, fan_in), jnp.float32,
                               minval=-bound, maxval=bound)
        b = jax.random.uniform(kb, (fan_out, 1), jnp.float32,
                               minval=-bound, maxval=bound)
        params.append((w, b))
    return params


def _reference_forward(params, t, Ifc_in, QH2IN, ic1, ic2, ic3):
    """Pure-JAX reference replicating the PyTorch forward exactly."""
    t = (t - 0.0) / FINAL_SIM_TIME
    Ifc_in = (Ifc_in - 100.0) / 600.0
    QH2IN = (QH2IN - 0.0) / 2.0
    ic1 = (ic1 - 0.0) / 1.5
    ic2 = (ic2 - 0.0) / 1.5
    ic3 = (ic3 - 0.0) / 4.0
    h = jnp.concatenate([t, Ifc_in, QH2IN, ic1, ic2, ic3], axis=1)
    for i, (w, b) in enumerate(params):
        h = h @ w.T + b.T
        if i < 5:
            h = jnp.tanh(h)
    return h


def _make_inputs(key, n):
    key, *ks = jax.random.split(key, 7)
    t = jax.random.uniform(ks[0], (n, 1), jnp.float32, 0.0, FINAL_SIM_TIME)
    Ifc = jax.random.uniform(ks[1], (n, 1), jnp.float32, 100.0, 700.0)
    QH2 = jax.random.uniform(ks[2], (n, 1), jnp.float32, 0.0, 2.0)
    ic1 = jax.random.uniform(ks[3], (n, 1), jnp.float32, 0.0, 1.5)
    ic2 = jax.random.uniform(ks[4], (n, 1), jnp.float32, 0.0, 1.5)
    ic3 = jax.random.uniform(ks[5], (n, 1), jnp.float32, 0.0, 4.0)
    return (t, Ifc, QH2, ic1, ic2, ic3)


if __name__ == "__main__":
    key = jax.random.PRNGKey(0)
    params = init_params(key)

    # Case 1: tiny batch (N=8) -> single 128-lane tile, padded ragged tail.
    inputs_small = _make_inputs(jax.random.PRNGKey(1), 8)
    out = jax.block_until_ready(net_forward(params, *inputs_small))
    ref = _reference_forward(params, *inputs_small)
    assert out.shape == (8, 3)
    assert jnp.allclose(out, ref, atol=1e-4, rtol=1e-4), (
        f"f32 small-batch max abs err {jnp.max(jnp.abs(out - ref))}")

    # Case 2: N=300 -> tb=256, 2 grid steps (exercises pipelining + padding).
    inputs_big = _make_inputs(jax.random.PRNGKey(2), 300)
    out2 = jax.block_until_ready(net_forward(params, *inputs_big))
    ref2 = _reference_forward(params, *inputs_big)
    assert out2.shape == (300, 3)
    assert jnp.allclose(out2, ref2, atol=1e-4, rtol=1e-4), (
        f"f32 multi-tile max abs err {jnp.max(jnp.abs(out2 - ref2))}")

    # Case 3: bf16 MXU path (looser tolerance; opt-in for v6e/v7x).
    out3 = jax.block_until_ready(
        net_forward(params, *inputs_big, use_bf16=True))
    assert jnp.allclose(out3, ref2, atol=5e-2, rtol=5e-2), (
        f"bf16 max abs err {jnp.max(jnp.abs(out3 - ref2))}")

    print("KERNEL_OK")
</pallas_src>

<mosaic_0001>
module attributes {stable_mosaic.version = 11 : i64} {
  func.func @_mlp_kernel(%arg0: i32, %arg1: memref<6x128xf32, #tpu.memory_space<vmem>>, %arg2: memref<64x6xf32, #tpu.memory_space<vmem>>, %arg3: memref<4x64x64xf32, #tpu.memory_space<vmem>>, %arg4: memref<3x64xf32, #tpu.memory_space<vmem>>, %arg5: memref<64x6xf32, #tpu.memory_space<vmem>>, %arg6: memref<3x128xf32, #tpu.memory_space<vmem>>) attributes {dimension_semantics = [#tpu.dimension_semantics<parallel>], iteration_bounds = array<i64: 1>, scalar_prefetch = 0 : i64, scratch_operands = 0 : i64, tpu.core_type = #tpu.core_type<tc>, window_params = [{transform_indices = @transform_0, window_bounds = array<i64: 6, 128>}, {pipeline_mode = #tpu.pipeline_mode<synchronous>, transform_indices = @transform_1, window_bounds = array<i64: 64, 6>}, {pipeline_mode = #tpu.pipeline_mode<synchronous>, transform_indices = @transform_2, window_bounds = array<i64: 4, 64, 64>}, {pipeline_mode = #tpu.pipeline_mode<synchronous>, transform_indices = @transform_3, window_bounds = array<i64: 3, 64>}, {pipeline_mode = #tpu.pipeline_mode<synchronous>, transform_indices = @transform_4, window_bounds = array<i64: 64, 6>}, {transform_indices = @transform_5, window_bounds = array<i64: 3, 128>}]} {
    %c0 = arith.constant 0 : index
    %c0_0 = arith.constant 0 : index
    %0 = vector.load %arg5[%c0, %c0_0] : memref<64x6xf32, #tpu.memory_space<vmem>>, vector<64x6xf32>
    %c0_1 = arith.constant 0 : index
    %c0_2 = arith.constant 0 : index
    %1 = vector.load %arg2[%c0_1, %c0_2] : memref<64x6xf32, #tpu.memory_space<vmem>>, vector<64x6xf32>
    %c0_3 = arith.constant 0 : index
    %c0_4 = arith.constant 0 : index
    %2 = vector.load %arg1[%c0_3, %c0_4] : memref<6x128xf32, #tpu.memory_space<vmem>>, vector<6x128xf32>
    %cst = arith.constant dense<0.000000e+00> : vector<64x128xf32>
    %3 = tpu.matmul %1, %2, %cst {dimension_numbers = #tpu.dot_dimension_numbers<[1], [0], [0], [1], [0, 0, 1, 1], [], []>} : vector<64x6xf32>, vector<6x128xf32>, vector<64x128xf32> -> vector<64x128xf32>
    %4 = vector.extract_strided_slice %0 {offsets = [0, 0], sizes = [64, 1], strides = [1, 1]} : vector<64x6xf32> to vector<64x1xf32>
    %5 = vector.broadcast %4 : vector<64x1xf32> to vector<64x128xf32>
    %6 = arith.addf %3, %5 : vector<64x128xf32>
    %7 = math.tanh %6 : vector<64x128xf32>
    %c0_5 = arith.constant 0 : index
    %c0_6 = arith.constant 0 : index
    %c0_7 = arith.constant 0 : index
    %8 = vector.load %arg3[%c0_5, %c0_6, %c0_7] : memref<4x64x64xf32, #tpu.memory_space<vmem>>, vector<1x64x64xf32>
    %9 = vector.shape_cast %8 : vector<1x64x64xf32> to vector<64x64xf32>
    %cst_8 = arith.constant dense<0.000000e+00> : vector<64x128xf32>
    %10 = tpu.matmul %9, %7, %cst_8 {dimension_numbers = #tpu.dot_dimension_numbers<[1], [0], [0], [1], [0, 0, 1, 1], [], []>} : vector<64x64xf32>, vector<64x128xf32>, vector<64x128xf32> -> vector<64x128xf32>
    %11 = vector.extract_strided_slice %0 {offsets = [0, 1], sizes = [64, 1], strides = [1, 1]} : vector<64x6xf32> to vector<64x1xf32>
    %12 = vector.broadcast %11 : vector<64x1xf32> to vector<64x128xf32>
    %13 = arith.addf %10, %12 : vector<64x128xf32>
    %14 = math.tanh %13 : vector<64x128xf32>
    %c1 = arith.constant 1 : index
    %c0_9 = arith.constant 0 : index
    %c0_10 = arith.constant 0 : index
    %15 = vector.load %arg3[%c1, %c0_9, %c0_10] : memref<4x64x64xf32, #tpu.memory_space<vmem>>, vector<1x64x64xf32>
    %16 = vector.shape_cast %15 : vector<1x64x64xf32> to vector<64x64xf32>
    %cst_11 = arith.constant dense<0.000000e+00> : vector<64x128xf32>
    %17 = tpu.matmul %16, %14, %cst_11 {dimension_numbers = #tpu.dot_dimension_numbers<[1], [0], [0], [1], [0, 0, 1, 1], [], []>} : vector<64x64xf32>, vector<64x128xf32>, vector<64x128xf32> -> vector<64x128xf32>
    %18 = vector.extract_strided_slice %0 {offsets = [0, 2], sizes = [64, 1], strides = [1, 1]} : vector<64x6xf32> to vector<64x1xf32>
    %19 = vector.broadcast %18 : vector<64x1xf32> to vector<64x128xf32>
    %20 = arith.addf %17, %19 : vector<64x128xf32>
    %21 = math.tanh %20 : vector<64x128xf32>
    %c2 = arith.constant 2 : index
    %c0_12 = arith.constant 0 : index
    %c0_13 = arith.constant 0 : index
    %22 = vector.load %arg3[%c2, %c0_12, %c0_13] : memref<4x64x64xf32, #tpu.memory_space<vmem>>, vector<1x64x64xf32>
    %23 = vector.shape_cast %22 : vector<1x64x64xf32> to vector<64x64xf32>
    %cst_14 = arith.constant dense<0.000000e+00> : vector<64x128xf32>
    %24 = tpu.matmul %23, %21, %cst_14 {dimension_numbers = #tpu.dot_dimension_numbers<[1], [0], [0], [1], [0, 0, 1, 1], [], []>} : vector<64x64xf32>, vector<64x128xf32>, vector<64x128xf32> -> vector<64x128xf32>
    %25 = vector.extract_strided_slice %0 {offsets = [0, 3], sizes = [64, 1], strides = [1, 1]} : vector<64x6xf32> to vector<64x1xf32>
    %26 = vector.broadcast %25 : vector<64x1xf32> to vector<64x128xf32>
    %27 = arith.addf %24, %26 : vector<64x128xf32>
    %28 = math.tanh %27 : vector<64x128xf32>
    %c3 = arith.constant 3 : index
    %c0_15 = arith.constant 0 : index
    %c0_16 = arith.constant 0 : index
    %29 = vector.load %arg3[%c3, %c0_15, %c0_16] : memref<4x64x64xf32, #tpu.memory_space<vmem>>, vector<1x64x64xf32>
    %30 = vector.shape_cast %29 : vector<1x64x64xf32> to vector<64x64xf32>
    %cst_17 = arith.constant dense<0.000000e+00> : vector<64x128xf32>
    %31 = tpu.matmul %30, %28, %cst_17 {dimension_numbers = #tpu.dot_dimension_numbers<[1], [0], [0], [1], [0, 0, 1, 1], [], []>} : vector<64x64xf32>, vector<64x128xf32>, vector<64x128xf32> -> vector<64x128xf32>
    %32 = vector.extract_strided_slice %0 {offsets = [0, 4], sizes = [64, 1], strides = [1, 1]} : vector<64x6xf32> to vector<64x1xf32>
    %33 = vector.broadcast %32 : vector<64x1xf32> to vector<64x128xf32>
    %34 = arith.addf %31, %33 : vector<64x128xf32>
    %35 = math.tanh %34 : vector<64x128xf32>
    %c0_18 = arith.constant 0 : index
    %c0_19 = arith.constant 0 : index
    %36 = vector.load %arg4[%c0_18, %c0_19] : memref<3x64xf32, #tpu.memory_space<vmem>>, vector<3x64xf32>
    %cst_20 = arith.constant dense<0.000000e+00> : vector<3x128xf32>
    %37 = tpu.matmul %36, %35, %cst_20 {dimension_numbers = #tpu.dot_dimension_numbers<[1], [0], [0], [1], [0, 0, 1, 1], [], []>} : vector<3x64xf32>, vector<64x128xf32>, vector<3x128xf32> -> vector<3x128xf32>
    %38 = vector.extract_strided_slice %0 {offsets = [0, 5], sizes = [3, 1], strides = [1, 1]} : vector<64x6xf32> to vector<3x1xf32>
    %39 = vector.broadcast %38 : vector<3x1xf32> to vector<3x128xf32>
    %40 = arith.addf %37, %39 : vector<3x128xf32>
    %c0_21 = arith.constant 0 : index
    %c0_22 = arith.constant 0 : index
    %41 = vector.load %arg6[%c0_21, %c0_22] : memref<3x128xf32, #tpu.memory_space<vmem>>, vector<3x128xf32>
    tpu.vector_store %arg6[%c0_21, %c0_22], %40 {strides = array<i32>} : memref<3x128xf32, #tpu.memory_space<vmem>>, vector<3x128xf32>,
    return
  }
  func.func @transform_0(%arg0: i32) -> (i32, i32) {
    %c0_i32 = arith.constant 0 : i32
    %c0_i32_0 = arith.constant 0 : i32
    return %c0_i32, %arg0 : i32, i32
  }
  func.func @transform_1(%arg0: i32) -> (i32, i32) {
    %c0_i32 = arith.constant 0 : i32
    %c0_i32_0 = arith.constant 0 : i32
    %c0_i32_1 = arith.constant 0 : i32
    return %c0_i32, %c0_i32_0 : i32, i32
  }
  func.func @transform_2(%arg0: i32) -> (i32, i32, i32) {
    %c0_i32 = arith.constant 0 : i32
    %c0_i32_0 = arith.constant 0 : i32
    %c0_i32_1 = arith.constant 0 : i32
    %c0_i32_2 = arith.constant 0 : i32
    return %c0_i32, %c0_i32_0, %c0_i32_1 : i32, i32, i32
  }
  func.func @transform_3(%arg0: i32) -> (i32, i32) {
    %c0_i32 = arith.constant 0 : i32
    %c0_i32_0 = arith.constant 0 : i32
    %c0_i32_1 = arith.constant 0 : i32
    return %c0_i32, %c0_i32_0 : i32, i32
  }
  func.func @transform_4(%arg0: i32) -> (i32, i32) {
    %c0_i32 = arith.constant 0 : i32
    %c0_i32_0 = arith.constant 0 : i32
    %c0_i32_1 = arith.constant 0 : i32
    return %c0_i32, %c0_i32_0 : i32, i32
  }
  func.func @transform_5(%arg0: i32) -> (i32, i32) {
    %c0_i32 = arith.constant 0 : i32
    %c0_i32_0 = arith.constant 0 : i32
    return %c0_i32, %arg0 : i32, i32
  }
}

</mosaic_0001>

<bundles_post_ra>
// kernel: tpu_custom_call.1
= control target key start
LH: loop header
LB: loop body
LE: loop exit
PB: predicated region body
PF: predicated region fallthrough
CT: control target
= control target key end

     0   :  { %10 = vsyncpa [#allocation3], 0  ;;  %s1075_s0 = inlined_call_operand.vmem [shape: f32[6,128], index: 0, kind: input, shape index: {}]   ;;  %s1076_s1 = inlined_call_operand.vmem [shape: f32[64,6], index: 1, kind: input, shape index: {}]   ;;  %s1077_s2 = inlined_call_operand.hbm [shape: f32[4,64,64], index: 2, kind: input, shape index: {}]   ;;  %s1078_s3 = inlined_call_operand.vmem [shape: f32[3,64], index: 3, kind: input, shape index: {}]   ;;  %s1079_s4 = inlined_call_operand.vmem [shape: f32[64,6], index: 4, kind: input, shape index: {}]   ;;  %s1080_s5 = inlined_call_operand.hbm [shape: f32[3,128], index: 5, kind: output, shape index: {}]  }
   0x1   :  { %11 = vsyncpa [#allocation4], 0  ;;  %s20_s20 = sshll.u32 %s1077_s2, 4  ;;  %s877_s21 = smov [#allocation2]   ;;  %s21_s20 = int_to_ptr.hbm [resolvable:$true] %s20_s20 }
   0x2   :  { %s22_s22 = sshll.u32 %s877_s21, 4  ;;  %s878_s23 = smov 128   ;;  %s23_s22 = int_to_ptr.vmem [resolvable:$true] %s22_s22 }
   0x3   :  { %s879_s24 = smov 8  }
   0x4   :  { %28 = dma.hbm_to_vmem [thread:$0]  %s21_s20, 4096, %s23_s22, [#allocation3], %s878_s23, %s878_s23, %s879_s24  }
   0x5   :  { %873 = dma.done.wait [#allocation3], 4096  }
   0x6   :  { %874 = vsyncadd [#allocation3], 4294963200  ;;  %v880_v0 = vmov 0   ;;  %vm119_vm0 = vcmask 1045504   ;;  %vm94_vm1 = vcmask 48128   ;;  %v47_v2 = vld [vmem:[%s1076_s1 + $0x10] sm:$0xff] }
   0x7   :  { %728 = vset.pattern.permute.xlu0 %v880_v0  ;;  %729 = vset.pattern.permute.xlu1 %v880_v0  ;;  %v53_v1 = vld [vmem:[%s1075_s0] sm:$0x3f]  ;;  %v51_v3 = vld [vmem:[%s1076_s1 + $0x30] sm:$0xff]  ;;  %v937_v5 = vld [vmem:[%s1079_s4 + $0x38] sm:$0xff]  ;;  %v881_v23 = vmov 1   ;;  %vm212_vm2 = vcmask 523264  }
   0x8   :  { %730 = vset.pattern.permute.xlu2 %v880_v0  ;;  %716 = vmatpush.msk.msra.mxu2 %vm119_vm0, %v53_v1  ;;  %v45_v4 = vld [vmem:[%s1076_s1] sm:$0xff]  ;;  %v942_v6 = vld [vmem:[%s1079_s4 + $0x28] sm:$0xff]  ;;  %v950_v7 = vld [vmem:[%s1079_s4 + $0x18] sm:$0xff]  ;;  %s886_s6 = smov [#allocation5]   ;;  %s664_s9 = sshll.u32 %s1080_s5, 4  ;;  %s665_s9 = int_to_ptr.hbm [resolvable:$true] %s664_s9 }
   0x9   :  { %717 = vmatpush.msk.msra.mxu3 %vm119_vm0, %v53_v1  ;;  %677 = vmatmul.msk.f32.vlgmr.msra.gmra.mxu2 %vm94_vm1, %v47_v2  ;;  %v48_v8 = vld [vmem:[%s1076_s1 + $0x18] sm:$0xff]  ;;  %v962_v10 = vld [vmem:[%s1079_s4 + $0x30] sm:$0xff]  ;;  %v46_v11 = vld [vmem:[%s1076_s1 + $0x8] sm:$0xff]  ;;  %s662_s7 = sshll.u32 %s886_s6, 4  ;;  %s663_s7 = int_to_ptr.vmem [resolvable:$true] %s662_s7 }
   0xa   :  { %681 = vmatmul.msk.f32.vlgmr.msra.gmra.mxu3 %vm94_vm1, %v51_v3  ;;  %674 = vmatpush.msk.msra.mxu0 %vm119_vm0, %v53_v1  ;;  %v52_v9 = vld [vmem:[%s1076_s1 + $0x38] sm:$0xff]  ;;  %v970_v12 = vld [vmem:[%s1079_s4 + $0x20] sm:$0xff]  ;;  %v977_v13 = vld [vmem:[%s1079_s4 + $0x10] sm:$0xff] }
   0xb   :  { %91 = vperm.xlu0 %728, %v937_v5   ;;  %675 = vmatmul.msk.f32.vlgmr.msra.gmra.mxu0 %vm94_vm1, %v45_v4  ;;  %v49_v14 = vld [vmem:[%s1076_s1 + $0x20] sm:$0xff]  ;;  %v989_v15 = vld [vmem:[%s1079_s4 + $0x8] sm:$0xff]  ;;  %v174_v53 = vld [vmem:[#allocation2 + $0x10] sm:$0xff]  ;;  %v882_v4 = vmov 2  }
   0xc   :  { %81 = vperm.xlu1 %729, %v942_v6   ;;  %71 = vperm.xlu2 %730, %v950_v7   ;;  %v994_v16 = vld [vmem:[%s1079_s4] sm:$0xff]  ;;  %v50_v17 = vld [vmem:[%s1076_s1 + $0x28] sm:$0xff]  ;;  %v175_v54 = vld [vmem:[#allocation2 + $0x18] sm:$0xff] }
   0xd   :  { %v172_v50 = vld [vmem:[#allocation2] sm:$0xff]  ;;  %v173_v52 = vld [vmem:[#allocation2 + $0x8] sm:$0xff]  ;;  %v178_v57 = vld [vmem:[#allocation2 + $0x30] sm:$0xff] }
   0xe   :  { %v176_v55 = vld [vmem:[#allocation2 + $0x20] sm:$0xff]  ;;  %v177_v56 = vld [vmem:[#allocation2 + $0x28] sm:$0xff]  ;;  %v179_v58 = vld [vmem:[#allocation2 + $0x38] sm:$0xff] }
  0x11   :  { %678 = vmatmul.msk.f32.gmra.mxu2 %vm94_vm1, %v48_v8 }
  0x12   :  { %682 = vmatmul.msk.f32.gmra.mxu3 %vm94_vm1, %v52_v9 }
  0x13   :  { %86 = vperm.xlu0 %728, %v962_v10   ;;  %676 = vmatmul.msk.f32.gmra.mxu0 %vm94_vm1, %v46_v11 }
  0x14   :  { %76 = vperm.xlu1 %729, %v970_v12   ;;  %66 = vperm.xlu2 %730, %v977_v13  }
  0x19   :  { %679 = vmatmul.msk.f32.gmra.mxu2 %vm94_vm1, %v49_v14 }
  0x1b   :  { %61 = vperm.xlu0 %728, %v989_v15  }
  0x1c   :  { %56 = vperm.xlu1 %729, %v994_v16   ;;  %731 = vset.pattern.permute.xlu2 %v881_v23 }
  0x1d   :  { %209 = vperm.xlu2 %731, %v937_v5  }
  0x21   :  { %680 = vmatmul.msk.f32.gmra.mxu2 %vm94_vm1, %v50_v17 }
  0x23   :  { %732 = vset.pattern.permute.xlu0 %v881_v23 }
  0x24   :  { %733 = vset.pattern.permute.xlu1 %v881_v23  ;;  %205 = vperm.xlu0 %732, %v962_v10  }
  0x25   :  { %201 = vperm.xlu1 %733, %v942_v6   ;;  %197 = vperm.xlu2 %731, %v970_v12  }
  0x2c   :  { %185 = vperm.xlu0 %732, %v989_v15  }
  0x2d   :  { %193 = vperm.xlu1 %733, %v950_v7   ;;  %189 = vperm.xlu2 %731, %v977_v13  }
  0x34   :  { %735 = vset.pattern.permute.xlu0 %v882_v4 }
  0x35   :  { %181 = vperm.xlu1 %733, %v994_v16   ;;  %320 = vperm.xlu0 %735, %v962_v10  }
  0x36   :  { %734 = vset.pattern.permute.xlu2 %v882_v4 }
  0x37   :  { %324 = vperm.xlu2 %734, %v937_v5  }
  0x3d   :  { %736 = vset.pattern.permute.xlu1 %v882_v4  ;;  %300 = vperm.xlu0 %735, %v989_v15  }
  0x3e   :  { %316 = vperm.xlu1 %736, %v942_v6  }
  0x3f   :  { %312 = vperm.xlu2 %734, %v970_v12  }
  0x46   :  { %308 = vperm.xlu1 %736, %v950_v7  }
  0x47   :  { %304 = vperm.xlu2 %734, %v977_v13  }
  0x4e   :  { %296 = vperm.xlu1 %736, %v994_v16  }
  0x66   :  { %v72_v28 = vpop.permute.xlu2 %71 }
  0x6e   :  { %v67_v37 = vpop.permute.xlu2 %66 }
  0x77   :  { %v210_v1 = vpop.permute.xlu2 %209 }
  0x7d   :  { %v92_v18 = vpop.permute.xlu0 %91 }
  0x7e   :  { %v82_v27 = vpop.permute.xlu1 %81 }
  0x7f   :  { %v198_v8 = vpop.permute.xlu2 %197 }
  0x85   :  { %v87_v21 = vpop.permute.xlu0 %86 }
  0x86   :  { %v77_v33 = vpop.permute.xlu1 %76 }
  0x88   :  { %v140_v32 = vpop.f32.mrf.mxu0 }
  0x8c   :  { %v146_v19 = vpop.f32.mrf.mxu2 }
  0x8d   :  { %v158_v20 = vpop.f32.mrf.mxu3  ;;  %v62_v40 = vpop.permute.xlu0 %61  ;;  %v147_v41 = vadd.f32 %v146_v19, %v67_v37  ;;  %v288_v37 = vld [vmem:[#allocation2 + $0x48] sm:$0xff] }
  0x8e   :  { %v159_v22 = vadd.f32 %v158_v20, %v87_v21  ;;  %v57_v42 = vpop.permute.xlu1 %56  ;;  %v190_v21 = vpop.permute.xlu2 %189 }
  0x8f   :  { %v141_v45 = vadd.f32 %v140_v32, %v57_v42  ;;  %v293_v42 = vld [vmem:[#allocation2 + $0x70] sm:$0xff] }
  0x90   :  { %745 = vtanh.f32 %v159_v22  ;;  %v143_v39 = vpop.f32.mrf.mxu0 }
  0x91   :  { %v144_v43 = vadd.f32 %v143_v39, %v62_v40  ;;  %v290_v39 = vld [vmem:[#allocation2 + $0x58] sm:$0xff]  ;;  %v291_v40 = vld [vmem:[#allocation2 + $0x60] sm:$0xff] }
  0x94   :  { %v149_v24 = vpop.f32.mrf.mxu2 }
  0x95   :  { %v161_v25 = vpop.f32.mrf.mxu3  ;;  %v150_v38 = vadd.f32 %v149_v24, %v72_v28 }
  0x96   :  { %v162_v26 = vadd.f32 %v161_v25, %v92_v18  ;;  %v746_v30 = vpop.eup %745  ;;  %v206_v9 = vpop.permute.xlu0 %205 }
  0x97   :  { %v202_v2 = vpop.permute.xlu1 %201 }
  0x98   :  { %747 = vtanh.f32 %v162_v26 }
  0x9c   :  { %v152_v29 = vpop.f32.mrf.mxu2 }
  0x9d   :  { %v153_v35 = vadd.f32 %v152_v29, %v77_v33 }
  0x9e   :  { %v748_v31 = vpop.eup %747  ;;  %v186_v23 = vpop.permute.xlu0 %185 }
  0x9f   :  { %245 = vmatpush.msra.mxu1 %v748_v31  ;;  %v194_v11 = vpop.permute.xlu1 %193 }
  0xa1   :  { %246 = vmatpush.msra.mxu1 %v746_v30 }
  0xa4   :  { %v155_v34 = vpop.f32.mrf.mxu2 }
  0xa5   :  { %v156_v36 = vadd.f32 %v155_v34, %v82_v27 }
  0xa7   :  { %749 = vtanh.f32 %v156_v36  ;;  %v182_v26 = vpop.permute.xlu1 %181 }
  0xa8   :  { %751 = vtanh.f32 %v153_v35  ;;  %v287_v35 = vld [vmem:[#allocation2 + $0x40] sm:$0xff] }
  0xa9   :  { %753 = vtanh.f32 %v150_v38  ;;  %v289_v38 = vld [vmem:[#allocation2 + $0x50] sm:$0xff] }
  0xaa   :  { %755 = vtanh.f32 %v147_v41  ;;  %v292_v41 = vld [vmem:[#allocation2 + $0x68] sm:$0xff] }
  0xab   :  { %757 = vtanh.f32 %v144_v43  ;;  %v294_v43 = vld [vmem:[#allocation2 + $0x78] sm:$0xff] }
  0xac   :  { %759 = vtanh.f32 %v141_v45 }
  0xad   :  { %v750_v44 = vpop.eup %749 }
  0xae   :  { %247 = vmatpush.msra.mxu1 %v750_v44  ;;  %v752_v46 = vpop.eup %751 }
  0xaf   :  { %v754_v47 = vpop.eup %753 }
  0xb0   :  { %248 = vmatpush.msra.mxu1 %v752_v46  ;;  %v756_v48 = vpop.eup %755 }
  0xb1   :  { %v758_v49 = vpop.eup %757 }
  0xb2   :  { %249 = vmatpush.msra.mxu1 %v754_v47  ;;  %v760_v51 = vpop.eup %759 }
  0xb4   :  { %250 = vmatpush.msra.mxu1 %v756_v48 }
  0xb6   :  { %251 = vmatpush.msra.mxu1 %v758_v49 }
  0xb8   :  { %252 = vmatpush.msra.mxu1 %v760_v51  ;;  %v317_v51 = vpop.permute.xlu1 %316 }
  0xb9   :  { %683 = vmatmul.msk.f32.vlgmr.msra.gmra.mxu1 %vm212_vm2, %v172_v50  ;;  %v325_v50 = vpop.permute.xlu2 %324 }
  0xc1   :  { %684 = vmatmul.msk.f32.gmra.mxu1 %vm212_vm2, %v173_v52 }
  0xc9   :  { %685 = vmatmul.msk.f32.gmra.mxu1 %vm212_vm2, %v174_v53  ;;  %v883_v53 = vmov 3  }
  0xca   :  { %739 = vset.pattern.permute.xlu1 %v883_v53  ;;  %738 = vset.pattern.permute.xlu0 %v883_v53 }
  0xcb   :  { %430 = vperm.xlu1 %739, %v942_v6   ;;  %434 = vperm.xlu0 %738, %v962_v10  }
  0xcc   :  { %737 = vset.pattern.permute.xlu2 %v883_v53 }
  0xcd   :  { %438 = vperm.xlu2 %737, %v937_v5  }
  0xd1   :  { %686 = vmatmul.msk.f32.gmra.mxu1 %vm212_vm2, %v175_v54  ;;  %v313_v54 = vpop.permute.xlu2 %312 }
  0xd3   :  { %422 = vperm.xlu1 %739, %v950_v7   ;;  %414 = vperm.xlu0 %738, %v989_v15  }
  0xd5   :  { %426 = vperm.xlu2 %737, %v970_v12  }
  0xd9   :  { %687 = vmatmul.msk.f32.gmra.mxu1 %vm212_vm2, %v176_v55  ;;  %v321_v55 = vpop.permute.xlu0 %320 }
  0xdb   :  { %410 = vperm.xlu1 %739, %v994_v16  }
  0xdd   :  { %418 = vperm.xlu2 %737, %v977_v13  }
  0xe1   :  { %688 = vmatmul.msk.f32.gmra.mxu1 %vm212_vm2, %v177_v56  ;;  %v309_v56 = vpop.permute.xlu1 %308 }
  0xe9   :  { %689 = vmatmul.msk.f32.gmra.mxu1 %vm212_vm2, %v178_v57 }
  0xf1   :  { %690 = vmatmul.msk.f32.gmra.mxu1 %vm212_vm2, %v179_v58 }
 0x136   :  { %v254_v59 = vpop.f32.mrf.mxu1 }
 0x137   :  { %v255_v30 = vadd.f32 %v254_v59, %v182_v26  ;;  %v406_v26 = vld [vmem:[#allocation2 + $0xa8] sm:$0xff] }
 0x13e   :  { %v257_v60 = vpop.f32.mrf.mxu1 }
 0x13f   :  { %v258_v28 = vadd.f32 %v257_v60, %v186_v23  ;;  %v403_v23 = vld [vmem:[#allocation2 + $0x90] sm:$0xff] }
 0x146   :  { %v260_v61 = vpop.f32.mrf.mxu1 }
 0x147   :  { %v261_v25 = vadd.f32 %v260_v61, %v190_v21 }
 0x14e   :  { %v263_v62 = vpop.f32.mrf.mxu1 }
 0x14f   :  { %v264_v22 = vadd.f32 %v263_v62, %v194_v11  ;;  %v305_v62 = vpop.permute.xlu2 %304 }
 0x156   :  { %v266_v63 = vpop.f32.mrf.mxu1 }
 0x157   :  { %v267_v20 = vadd.f32 %v266_v63, %v198_v8 }
 0x15e   :  { %v269_v0 = vpop.f32.mrf.mxu1 }
 0x15f   :  { %v270_v19 = vadd.f32 %v269_v0, %v202_v2  ;;  %v301_v0 = vpop.permute.xlu0 %300 }
 0x166   :  { %v272_v3 = vpop.f32.mrf.mxu1 }
 0x167   :  { %v273_v17 = vadd.f32 %v272_v3, %v206_v9  ;;  %v297_v3 = vpop.permute.xlu1 %296 }
 0x16e   :  { %v275_v14 = vpop.f32.mrf.mxu1 }
 0x16f   :  { %v276_v18 = vadd.f32 %v275_v14, %v210_v1 }
 0x171   :  { %761 = vtanh.f32 %v276_v18 }
 0x172   :  { %763 = vtanh.f32 %v273_v17 }
 0x173   :  { %765 = vtanh.f32 %v270_v19 }
 0x174   :  { %767 = vtanh.f32 %v267_v20  ;;  %v401_v20 = vld [vmem:[#allocation2 + $0x80] sm:$0xff] }
 0x175   :  { %769 = vtanh.f32 %v264_v22  ;;  %v402_v22 = vld [vmem:[#allocation2 + $0x88] sm:$0xff] }
 0x176   :  { %771 = vtanh.f32 %v261_v25  ;;  %v405_v25 = vld [vmem:[#allocation2 + $0xa0] sm:$0xff] }
 0x177   :  { %v762_v24 = vpop.eup %761  ;;  %773 = vtanh.f32 %v258_v28  ;;  %v408_v28 = vld [vmem:[#allocation2 + $0xb8] sm:$0xff] }
 0x178   :  { %359 = vmatpush.msrb.mxu2 %v762_v24  ;;  %v764_v27 = vpop.eup %763  ;;  %775 = vtanh.f32 %v255_v30  ;;  %v404_v24 = vld [vmem:[#allocation2 + $0x98] sm:$0xff] }
 0x179   :  { %v766_v29 = vpop.eup %765 }
 0x17a   :  { %360 = vmatpush.msrb.mxu2 %v764_v27  ;;  %v768_v31 = vpop.eup %767  ;;  %v407_v27 = vld [vmem:[#allocation2 + $0xb0] sm:$0xff] }
 0x17b   :  { %v770_v32 = vpop.eup %769 }
 0x17c   :  { %361 = vmatpush.msrb.mxu2 %v766_v29  ;;  %v772_v33 = vpop.eup %771 }
 0x17d   :  { %v774_v34 = vpop.eup %773 }
 0x17e   :  { %362 = vmatpush.msrb.mxu2 %v768_v31  ;;  %v776_v36 = vpop.eup %775 }
 0x180   :  { %363 = vmatpush.msrb.mxu2 %v770_v32 }
 0x182   :  { %364 = vmatpush.msrb.mxu2 %v772_v33 }
 0x184   :  { %365 = vmatpush.msrb.mxu2 %v774_v34 }
 0x186   :  { %366 = vmatpush.msrb.mxu2 %v776_v36  ;;  %v884_v36 = vmov 4  }
 0x187   :  { %691 = vmatmul.msk.f32.vlgmr.msrb.gmra.mxu2 %vm212_vm2, %v287_v35  ;;  %v439_v35 = vpop.permute.xlu2 %438  ;;  %742 = vset.pattern.permute.xlu1 %v884_v36 }
 0x188   :  { %741 = vset.pattern.permute.xlu0 %v884_v36  ;;  %544 = vperm.xlu1 %742, %v942_v6  }
 0x189   :  { %548 = vperm.xlu0 %741, %v962_v10   ;;  %740 = vset.pattern.permute.xlu2 %v884_v36 }
 0x18a   :  { %552 = vperm.xlu2 %740, %v937_v5  }
 0x18f   :  { %692 = vmatmul.msk.f32.gmra.mxu2 %vm212_vm2, %v288_v37  ;;  %v431_v37 = vpop.permute.xlu1 %430 }
 0x190   :  { %536 = vperm.xlu1 %742, %v950_v7  }
 0x191   :  { %528 = vperm.xlu0 %741, %v989_v15  }
 0x192   :  { %540 = vperm.xlu2 %740, %v970_v12  }
 0x197   :  { %693 = vmatmul.msk.f32.gmra.mxu2 %vm212_vm2, %v289_v38 }
 0x198   :  { %524 = vperm.xlu1 %742, %v994_v16  }
 0x19a   :  { %532 = vperm.xlu2 %740, %v977_v13  }
 0x19f   :  { %694 = vmatmul.msk.f32.gmra.mxu2 %vm212_vm2, %v290_v39  ;;  %v427_v39 = vpop.permute.xlu2 %426 }
 0x1a7   :  { %695 = vmatmul.msk.f32.gmra.mxu2 %vm212_vm2, %v291_v40  ;;  %v435_v40 = vpop.permute.xlu0 %434  ;;  %v419_v5 = vpop.permute.xlu2 %418 }
 0x1af   :  { %696 = vmatmul.msk.f32.gmra.mxu2 %vm212_vm2, %v292_v41  ;;  %v423_v41 = vpop.permute.xlu1 %422  ;;  %v415_v7 = vpop.permute.xlu0 %414 }
 0x1b7   :  { %697 = vmatmul.msk.f32.gmra.mxu2 %vm212_vm2, %v293_v42  ;;  %v411_v12 = vpop.permute.xlu1 %410 }
 0x1bf   :  { %698 = vmatmul.msk.f32.gmra.mxu2 %vm212_vm2, %v294_v43 }
 0x20a   :  { %v368_v44 = vpop.f32.mrf.mxu2 }
 0x20b   :  { %v369_v11 = vadd.f32 %v368_v44, %v297_v3 }
 0x212   :  { %v371_v45 = vpop.f32.mrf.mxu2 }
 0x213   :  { %v372_v8 = vadd.f32 %v371_v45, %v301_v0 }
 0x21a   :  { %v374_v46 = vpop.f32.mrf.mxu2 }
 0x21b   :  { %v375_v2 = vadd.f32 %v374_v46, %v305_v62  ;;  %v522_v62 = vld [vmem:[#allocation2 + $0xf8] sm:$0xff] }
 0x222   :  { %v377_v47 = vpop.f32.mrf.mxu2 }
 0x223   :  { %v378_v63 = vadd.f32 %v377_v47, %v309_v56  ;;  %v516_v56 = vld [vmem:[#allocation2 + $0xc8] sm:$0xff] }
 0x22a   :  { %v380_v48 = vpop.f32.mrf.mxu2 }
 0x22b   :  { %v381_v61 = vadd.f32 %v380_v48, %v313_v54  ;;  %v515_v54 = vld [vmem:[#allocation2 + $0xc0] sm:$0xff] }
 0x232   :  { %v383_v49 = vpop.f32.mrf.mxu2 }
 0x233   :  { %v384_v60 = vadd.f32 %v383_v49, %v317_v51 }
 0x23a   :  { %v386_v52 = vpop.f32.mrf.mxu2 }
 0x23b   :  { %v387_v58 = vadd.f32 %v386_v52, %v321_v55 }
 0x242   :  { %v389_v57 = vpop.f32.mrf.mxu2 }
 0x243   :  { %v390_v59 = vadd.f32 %v389_v57, %v325_v50  ;;  %v517_v57 = vld [vmem:[#allocation2 + $0xd0] sm:$0xff] }
 0x245   :  { %777 = vtanh.f32 %v390_v59  ;;  %v519_v59 = vld [vmem:[#allocation2 + $0xe0] sm:$0xff] }
 0x246   :  { %779 = vtanh.f32 %v387_v58  ;;  %v518_v58 = vld [vmem:[#allocation2 + $0xd8] sm:$0xff] }
 0x247   :  { %781 = vtanh.f32 %v384_v60  ;;  %v520_v60 = vld [vmem:[#allocation2 + $0xe8] sm:$0xff] }
 0x248   :  { %783 = vtanh.f32 %v381_v61  ;;  %v521_v61 = vld [vmem:[#allocation2 + $0xf0] sm:$0xff] }
 0x249   :  { %785 = vtanh.f32 %v378_v63 }
 0x24a   :  { %787 = vtanh.f32 %v375_v2 }
 0x24b   :  { %v778_v1 = vpop.eup %777  ;;  %789 = vtanh.f32 %v372_v8  ;;  %v553_v8 = vpop.permute.xlu2 %552 }
 0x24c   :  { %473 = vmatpush.msrb.mxu3 %v778_v1  ;;  %v780_v4 = vpop.eup %779  ;;  %791 = vtanh.f32 %v369_v11 }
 0x24d   :  { %v782_v9 = vpop.eup %781 }
 0x24e   :  { %474 = vmatpush.msrb.mxu3 %v780_v4  ;;  %v784_v14 = vpop.eup %783 }
 0x24f   :  { %v786_v17 = vpop.eup %785 }
 0x250   :  { %475 = vmatpush.msrb.mxu3 %v782_v9  ;;  %v788_v18 = vpop.eup %787  ;;  %v545_v9 = vpop.permute.xlu1 %544 }
 0x251   :  { %v790_v19 = vpop.eup %789 }
 0x252   :  { %476 = vmatpush.msrb.mxu3 %v784_v14  ;;  %v792_v21 = vpop.eup %791  ;;  %v885_v14 = vmov 5  }
 0x253   :  { %743 = vset.pattern.permute.xlu2 %v885_v14  ;;  %744 = vset.pattern.permute.xlu0 %v885_v14 }
 0x254   :  { %477 = vmatpush.msrb.mxu3 %v786_v17  ;;  %630 = vperm.xlu2 %743, %v994_v16   ;;  %v541_v17 = vpop.permute.xlu2 %540 }
 0x256   :  { %478 = vmatpush.msrb.mxu3 %v788_v18  ;;  %v549_v18 = vpop.permute.xlu0 %548 }
 0x258   :  { %479 = vmatpush.msrb.mxu3 %v790_v19  ;;  %v537_v19 = vpop.permute.xlu1 %536 }
 0x25a   :  { %480 = vmatpush.msrb.mxu3 %v792_v21 }
 0x25b   :  { %699 = vmatmul.msk.f32.vlgmr.msrb.gmra.mxu3 %vm212_vm2, %v401_v20 }
 0x263   :  { %700 = vmatmul.msk.f32.gmra.mxu3 %vm212_vm2, %v402_v22 }
 0x26b   :  { %701 = vmatmul.msk.f32.gmra.mxu3 %vm212_vm2, %v403_v23 }
 0x273   :  { %702 = vmatmul.msk.f32.gmra.mxu3 %vm212_vm2, %v404_v24 }
 0x27b   :  { %703 = vmatmul.msk.f32.gmra.mxu3 %vm212_vm2, %v405_v25  ;;  %v533_v25 = vpop.permute.xlu2 %532 }
 0x283   :  { %704 = vmatmul.msk.f32.gmra.mxu3 %vm212_vm2, %v406_v26 }
 0x28b   :  { %705 = vmatmul.msk.f32.gmra.mxu3 %vm212_vm2, %v407_v27  ;;  %v529_v27 = vpop.permute.xlu0 %528 }
 0x293   :  { %706 = vmatmul.msk.f32.gmra.mxu3 %vm212_vm2, %v408_v28 }
 0x2de   :  { %v482_v29 = vpop.f32.mrf.mxu3 }
 0x2df   :  { %v483_v50 = vadd.f32 %v482_v29, %v411_v12 }
 0x2e6   :  { %v485_v30 = vpop.f32.mrf.mxu3 }
 0x2e7   :  { %v486_v48 = vadd.f32 %v485_v30, %v415_v7  ;;  %v525_v30 = vpop.permute.xlu1 %524 }
 0x2ee   :  { %v488_v31 = vpop.f32.mrf.mxu3 }
 0x2ef   :  { %v489_v46 = vadd.f32 %v488_v31, %v419_v5 }
 0x2f6   :  { %v491_v32 = vpop.f32.mrf.mxu3 }
 0x2f7   :  { %v492_v45 = vadd.f32 %v491_v32, %v423_v41 }
 0x2fe   :  { %v494_v33 = vpop.f32.mrf.mxu3 }
 0x2ff   :  { %v495_v10 = vadd.f32 %v494_v33, %v427_v39 }
 0x306   :  { %v497_v34 = vpop.f32.mrf.mxu3 }
 0x307   :  { %v498_v6 = vadd.f32 %v497_v34, %v431_v37 }
 0x30e   :  { %v500_v38 = vpop.f32.mrf.mxu3 }
 0x30f   :  { %v501_v43 = vadd.f32 %v500_v38, %v435_v40  ;;  %v628_v38 = vld [vmem:[%s1078_s3] sm:$0x7]  ;;  %v631_v40 = vpop.permute.xlu2 %630 }
 0x316   :  { %v503_v42 = vpop.f32.mrf.mxu3 }
 0x317   :  { %v504_v44 = vadd.f32 %v503_v42, %v439_v35 }
 0x319   :  { %793 = vtanh.f32 %v504_v44 }
 0x31a   :  { %795 = vtanh.f32 %v501_v43 }
 0x31b   :  { %797 = vtanh.f32 %v498_v6 }
 0x31c   :  { %799 = vtanh.f32 %v495_v10 }
 0x31d   :  { %801 = vtanh.f32 %v492_v45 }
 0x31e   :  { %803 = vtanh.f32 %v489_v46 }
 0x31f   :  { %v794_v15 = vpop.eup %793  ;;  %805 = vtanh.f32 %v486_v48 }
 0x320   :  { %587 = vmatpush.msrb.mxu0 %v794_v15  ;;  %v796_v47 = vpop.eup %795  ;;  %807 = vtanh.f32 %v483_v50 }
 0x321   :  { %v798_v49 = vpop.eup %797 }
 0x322   :  { %588 = vmatpush.msrb.mxu0 %v796_v47  ;;  %v800_v51 = vpop.eup %799 }
 0x323   :  { %v802_v13 = vpop.eup %801 }
 0x324   :  { %589 = vmatpush.msrb.mxu0 %v798_v49  ;;  %v804_v52 = vpop.eup %803 }
 0x325   :  { %v806_v53 = vpop.eup %805 }
 0x326   :  { %590 = vmatpush.msrb.mxu0 %v800_v51  ;;  %v808_v55 = vpop.eup %807 }
 0x328   :  { %591 = vmatpush.msrb.mxu0 %v802_v13 }
 0x32a   :  { %592 = vmatpush.msrb.mxu0 %v804_v52 }
 0x32c   :  { %593 = vmatpush.msrb.mxu0 %v806_v53 }
 0x32e   :  { %594 = vmatpush.msrb.mxu0 %v808_v55 }
 0x32f   :  { %707 = vmatmul.msk.f32.vlgmr.msrb.gmra.mxu0 %vm212_vm2, %v515_v54 }
 0x337   :  { %708 = vmatmul.msk.f32.gmra.mxu0 %vm212_vm2, %v516_v56 }
 0x33f   :  { %709 = vmatmul.msk.f32.gmra.mxu0 %vm212_vm2, %v517_v57 }
 0x347   :  { %710 = vmatmul.msk.f32.gmra.mxu0 %vm212_vm2, %v518_v58 }
 0x34f   :  { %711 = vmatmul.msk.f32.gmra.mxu0 %vm212_vm2, %v519_v59 }
 0x357   :  { %712 = vmatmul.msk.f32.gmra.mxu0 %vm212_vm2, %v520_v60 }
 0x35f   :  { %713 = vmatmul.msk.f32.gmra.mxu0 %vm212_vm2, %v521_v61 }
 0x367   :  { %714 = vmatmul.msk.f32.gmra.mxu0 %vm212_vm2, %v522_v62 }
 0x3ac   :  { %v596_v63 = vpop.f32.mrf.mxu0 }
 0x3ad   :  { %v597_v33 = vadd.f32 %v596_v63, %v525_v30 }
 0x3b4   :  { %v599_v0 = vpop.f32.mrf.mxu0 }
 0x3b5   :  { %v600_v31 = vadd.f32 %v599_v0, %v529_v27 }
 0x3bc   :  { %v602_v1 = vpop.f32.mrf.mxu0 }
 0x3bd   :  { %v603_v29 = vadd.f32 %v602_v1, %v533_v25 }
 0x3c4   :  { %v605_v2 = vpop.f32.mrf.mxu0 }
 0x3c5   :  { %v606_v26 = vadd.f32 %v605_v2, %v537_v19 }
 0x3cc   :  { %v608_v3 = vpop.f32.mrf.mxu0 }
 0x3cd   :  { %v609_v24 = vadd.f32 %v608_v3, %v541_v17 }
 0x3d4   :  { %v611_v4 = vpop.f32.mrf.mxu0 }
 0x3d5   :  { %v612_v23 = vadd.f32 %v611_v4, %v545_v9 }
 0x3dc   :  { %v614_v11 = vpop.f32.mrf.mxu0 }
 0x3dd   :  { %v615_v21 = vadd.f32 %v614_v11, %v549_v18 }
 0x3e4   :  { %v617_v20 = vpop.f32.mrf.mxu0 }
 0x3e5   :  { %v618_v22 = vadd.f32 %v617_v20, %v553_v8 }
 0x3e7   :  { %809 = vtanh.f32 %v618_v22 }
 0x3e8   :  { %811 = vtanh.f32 %v615_v21 }
 0x3e9   :  { %813 = vtanh.f32 %v612_v23 }
 0x3ea   :  { %815 = vtanh.f32 %v609_v24 }
 0x3eb   :  { %817 = vtanh.f32 %v606_v26 }
 0x3ec   :  { %819 = vtanh.f32 %v603_v29 }
 0x3ed   :  { %v810_v28 = vpop.eup %809  ;;  %821 = vtanh.f32 %v600_v31 }
 0x3ee   :  { %644 = vmatpush.msrb.mxu1 %v810_v28  ;;  %v812_v16 = vpop.eup %811  ;;  %823 = vtanh.f32 %v597_v33 }
 0x3ef   :  { %v814_v32 = vpop.eup %813 }
 0x3f0   :  { %645 = vmatpush.msrb.mxu1 %v812_v16  ;;  %v816_v34 = vpop.eup %815 }
 0x3f1   :  { %v818_v35 = vpop.eup %817 }
 0x3f2   :  { %646 = vmatpush.msrb.mxu1 %v814_v32  ;;  %v820_v36 = vpop.eup %819 }
 0x3f3   :  { %v822_v37 = vpop.eup %821 }
 0x3f4   :  { %647 = vmatpush.msrb.mxu1 %v816_v34  ;;  %v824_v39 = vpop.eup %823 }
 0x3f6   :  { %648 = vmatpush.msrb.mxu1 %v818_v35 }
 0x3f8   :  { %649 = vmatpush.msrb.mxu1 %v820_v36 }
 0x3fa   :  { %650 = vmatpush.msrb.mxu1 %v822_v37 }
 0x3fc   :  { %651 = vmatpush.msrb.mxu1 %v824_v39 }
 0x3fd   :  { %715 = vmatmul.msk.f32.vlgmr.msrb.gmra.mxu1 %vm212_vm2, %v628_v38 }
 0x47a   :  { %v653_v41 = vpop.f32.mrf.mxu1 }
 0x47b   :  { %v654_v42 = vadd.f32 %v653_v41, %v631_v40 }
 0x47d   :  { %656 = vst [vmem:[#allocation5] sm:$0x7] %v654_v42 }
 0x47e   :  { %667 = dma.vmem_to_hbm [thread:$0]  %s663_s7, 64, %s665_s9, [#allocation4]  }
 0x47f   :  { %875 = dma.done.wait [#allocation4], 64  }
 0x480   :  { %876 = vsyncadd [#allocation4], 4294967232 }
 0x481   :  { %672 = vsyncpa [#allocation3], 1 }
 0x482   :  { %673 = vsyncpa [#allocation4], 1 }

</bundles_post_ra>
